<compile_context>
chip_gen: v7x
topology: tpu7x:2x2x1
jax: 0.10.0
libtpu: 0.0.40
codegen_flags: <defaults>
</compile_context>

<pallas_src>
import math
import functools

import jax
import jax.numpy as jnp
from jax.experimental import pallas as pl
from jax.experimental.pallas import tpu as pltpu


def make_positional_encoding_buffer(d_model, max_len=5000, dtype=jnp.float32):
    """Builds the `pe` buffer exactly as the PyTorch __init__ does."""
    position = jnp.arange(0, max_len, dtype=jnp.float32)[:, None]          # (max_len, 1)
    div_term = jnp.exp(
        jnp.arange(0, d_model, 2, dtype=jnp.float32) * (-math.log(10000.0) / d_model)
    )                                                                       # (ceil(d/2),)
    pe = jnp.zeros((max_len, d_model), dtype=jnp.float32)
    pe = pe.at[:, 0::2].set(jnp.sin(position * div_term))
    if d_model % 2 == 1:
        pe = pe.at[:, 1::2].set(jnp.cos(position * div_term[: d_model // 2]))
    else:
        pe = pe.at[:, 1::2].set(jnp.cos(position * div_term))
    return pe[:, None, :].astype(dtype)                                     # (max_len, 1, d_model)


def _pe_dropout_kernel(seed_ref, x_ref, pe_ref, o_ref, *, batch, dropout_p, training):
    # x_ref / o_ref: (ts, B*D) lane-dense slab; pe_ref: (ts, D).
    # Replicate pe across the batch along the lane axis: [s, b*D + d] <- pe[s, d].
    pe_rep = jnp.tile(pe_ref[...].astype(jnp.float32), (1, batch))          # (ts, B*D)
    y = x_ref[...].astype(jnp.float32) + pe_rep

    if training and dropout_p > 0.0:
        keep = 1.0 - float(dropout_p)
        ts, cols = y.shape
        # Stateless counter-based PRNG: hash of (seed, global element index).
        # Pure integer VPU ops -> lowers on Mosaic and in interpret mode
        # (unlike pltpu.prng_seed / prng_random_bits).
        row = jax.lax.broadcasted_iota(jnp.int32, y.shape, 0) + pl.program_id(0) * ts
        col = jax.lax.broadcasted_iota(jnp.int32, y.shape, 1)
        idx = (row * cols + col).astype(jnp.uint32)
        seed_mix = seed_ref[0].astype(jnp.uint32) * jnp.uint32(0x9E3779B9)
        h = idx ^ seed_mix
        h = (h ^ (h >> 16)) * jnp.uint32(0x7FEB352D)
        h = (h ^ (h >> 15)) * jnp.uint32(0x846CA68B)
        h = h ^ (h >> 16)
        # Integer-space keep test: keep iff low-31-bit hash < keep * 2^31.
        h31 = (h & jnp.uint32(0x7FFFFFFF)).astype(jnp.int32)
        thresh = jnp.int32(min(int(keep * float(1 << 31)), (1 << 31) - 1))
        # TODO(synk): PyTorch's nn.Dropout RNG stream cannot be reproduced
        # bit-exactly; semantics (keep w.p. 1-p, scale kept by 1/(1-p)) match.
        y = jnp.where(h31 < thresh, y * jnp.float32(1.0 / keep), jnp.float32(0.0))

    o_ref[...] = y.astype(o_ref.dtype)


def positional_encoding_forward(x, pe, *, dropout_p=0.1, training=True, seed=0,
                                block_bytes=4 * 1024 * 1024):
    """x: (S, B, D); pe: (max_len, 1, D). Returns dropout(x + pe[:S])."""
    S, B, D = x.shape
    C = B * D
    x2d = x.reshape(S, C)                    # lane-dense 2D view (free reshape)
    pe2d = pe.reshape(pe.shape[0], D)        # (max_len, D); no pe[:S] slice needed

    # Sequence tile from a byte budget: double-buffered (x + out + pe) blocks
    # stay well under the v7x 64 MiB VMEM while reaching ~HBM roofline.
    row_bytes = C * x.dtype.itemsize
    ts = min(S, max(1, block_bytes // row_bytes))
    if ts < S:
        ts = max(8, (ts // 8) * 8)           # sublane-aligned tile
    grid = (pl.cdiv(S, ts),)

    # pe block's leading dim must be 8-aligned or span the full array; only in
    # the rare case ts == S with S not a multiple of 8 do we fall back to a slice.
    pe_src = pe2d
    if ts % 8 != 0 and ts != pe2d.shape[0]:
        pe_src = pe2d[:S]

    kernel = functools.partial(
        _pe_dropout_kernel, batch=B,
        dropout_p=float(dropout_p), training=bool(training),
    )
    seed_arr = jnp.array([seed], dtype=jnp.int32)

    y2d = pl.pallas_call(
        kernel,
        out_shape=jax.ShapeDtypeStruct((S, C), x.dtype),
        grid_spec=pltpu.PrefetchScalarGridSpec(
            num_scalar_prefetch=1,
            grid=grid,
            in_specs=[
                pl.BlockSpec((ts, C), lambda i, seed_ref: (i, 0)),
                pl.BlockSpec((ts, D), lambda i, seed_ref: (i, 0)),
            ],
            out_specs=pl.BlockSpec((ts, C), lambda i, seed_ref: (i, 0)),
        ),
        compiler_params=pltpu.CompilerParams(
            dimension_semantics=("parallel",),       # independent steps -> both v7x TCs
            vmem_limit_bytes=48 * 1024 * 1024,       # explicit cap, fits v5e/v6e/v7x
        ),
    )(seed_arr, x2d, pe_src)

    return y2d.reshape(S, B, D)


if __name__ == "__main__":
    # Small shapes consistent with the module: seq=8, batch=2, d_model=32.
    S, B, D = 8, 2, 32
    MAX_LEN = 64

    key = jax.random.PRNGKey(0)
    x = jax.random.normal(key, (S, B, D), dtype=jnp.float32)
    pe = make_positional_encoding_buffer(D, max_len=MAX_LEN)

    # Eval-mode (dropout is identity): check against plain-JAX reference.
    y_eval = positional_encoding_forward(x, pe, dropout_p=0.1, training=False)
    y_eval = jax.block_until_ready(y_eval)
    ref = x + pe[:S]
    assert jnp.allclose(y_eval, ref, atol=1e-6), "eval-mode mismatch"

    # Training-mode dropout (in-kernel counter-hash PRNG).
    y_train = positional_encoding_forward(x, pe, dropout_p=0.1, training=True, seed=0)
    y_train = jax.block_until_ready(y_train)
    assert y_train.shape == (S, B, D)
    # Every output element is either 0 (dropped) or (x+pe)/keep (kept).
    keep = 0.9
    scaled = ref * jnp.float32(1.0 / keep)
    kept_ok = jnp.isclose(y_train, scaled, atol=1e-5)
    dropped_ok = jnp.isclose(y_train, 0.0, atol=1e-6)
    assert bool(jnp.all(kept_ok | dropped_ok)), "train-mode dropout semantics mismatch"

    print("KERNEL_OK")
</pallas_src>

<mosaic_0001>
module attributes {stable_mosaic.version = 11 : i64} {
  func.func @_pe_dropout_kernel(%arg0: i32, %arg1: memref<1xi32, #tpu.memory_space<smem>>, %arg2: memref<8x64xf32, #tpu.memory_space<vmem>>, %arg3: memref<8x32xf32, #tpu.memory_space<vmem>>, %arg4: memref<8x64xf32, #tpu.memory_space<vmem>>) attributes {dimension_semantics = [#tpu.dimension_semantics<parallel>], iteration_bounds = array<i64: 1>, scalar_prefetch = 1 : i64, scratch_operands = 0 : i64, tpu.core_type = #tpu.core_type<tc>, window_params = [{transform_indices = @transform_0, window_bounds = array<i64: 8, 64>}, {transform_indices = @transform_1, window_bounds = array<i64: 8, 32>}, {transform_indices = @transform_2, window_bounds = array<i64: 8, 64>}]} {
    %c0 = arith.constant 0 : index
    %c0_0 = arith.constant 0 : index
    %0 = vector.load %arg3[%c0, %c0_0] : memref<8x32xf32, #tpu.memory_space<vmem>>, vector<8x32xf32>
    %1 = tpu.concatenate %0, %0 in 1 : vector<8x32xf32>, vector<8x32xf32> -> vector<8x64xf32>
    %c0_1 = arith.constant 0 : index
    %c0_2 = arith.constant 0 : index
    %2 = vector.load %arg2[%c0_1, %c0_2] : memref<8x64xf32, #tpu.memory_space<vmem>>, vector<8x64xf32>
    %3 = arith.addf %2, %1 : vector<8x64xf32>
    %c0_3 = arith.constant 0 : index
    %c0_4 = arith.constant 0 : index
    %4 = vector.load %arg4[%c0_3, %c0_4] : memref<8x64xf32, #tpu.memory_space<vmem>>, vector<8x64xf32>
    tpu.vector_store %arg4[%c0_3, %c0_4], %3 {strides = array<i32>} : memref<8x64xf32, #tpu.memory_space<vmem>>, vector<8x64xf32>,
    return
  }
  func.func @transform_0(%arg0: i32, %arg1: memref<1xi32, #tpu.memory_space<smem>>) -> (i32, i32) {
    %c0_i32 = arith.constant 0 : i32
    %c0_i32_0 = arith.constant 0 : i32
    return %arg0, %c0_i32 : i32, i32
  }
  func.func @transform_1(%arg0: i32, %arg1: memref<1xi32, #tpu.memory_space<smem>>) -> (i32, i32) {
    %c0_i32 = arith.constant 0 : i32
    %c0_i32_0 = arith.constant 0 : i32
    return %arg0, %c0_i32 : i32, i32
  }
  func.func @transform_2(%arg0: i32, %arg1: memref<1xi32, #tpu.memory_space<smem>>) -> (i32, i32) {
    %c0_i32 = arith.constant 0 : i32
    %c0_i32_0 = arith.constant 0 : i32
    return %arg0, %c0_i32 : i32, i32
  }
}

</mosaic_0001>

<bundles_post_ra>
// kernel: tpu_custom_call.1
= control target key start
LH: loop header
LB: loop body
LE: loop exit
PB: predicated region body
PF: predicated region fallthrough
CT: control target
= control target key end

     0   :  { %s105_s0 = inlined_call_operand.<no memory space> [shape: s32[1], index: 0, kind: input, shape index: {}]   ;;  %s106_s1 = inlined_call_operand.vmem [shape: f32[8,64], index: 1, kind: input, shape index: {}]   ;;  %s107_s2 = inlined_call_operand.vmem [shape: f32[64,32], index: 2, kind: input, shape index: {}]   ;;  %s108_s3 = inlined_call_operand.hbm [shape: f32[8,64], index: 3, kind: output, shape index: {}]  }
   0x1   :  { %v14_v0 = vld [vmem:[%s107_s2] sm:$0xff] }
   0x2   :  { %9 = vsyncpa [#allocation5], 0  ;;  %s65_s14 = smov 32   ;;  %vm19_vm0 = vcmask 261120   ;;  %v21_v1 = vld [vmem:[%s106_s1] sm:$0xff]  ;;  %s66_s0 = smov [#allocation4]  }
   0x3   :  { %16 = vrot.lane.b32.xlu0 %v14_v0, %s65_s14  ;;  %s31_s17 = sshll.u32 %s66_s0, 4  ;;  %vm23_vm1 = vcmask 523264   ;;  %s32_s17 = int_to_ptr.vmem [resolvable:$true] %s31_s17 }
   0x4   :  { %s41_s18 = scalar_lea.vmem %s32_s17, 128  ;;  %p46_p1 = scmp.lt.s32.totalorder %s32_s17, %s32_s17 }
   0x5   :  { %p42_p0 = scmp.ne.s32.totalorder %s32_s17, %s41_s18  ;;  %p47_p2 = scmp.lt.s32.totalorder %s41_s18, %s41_s18 }
   0x7   :  { %p48_p3 = por %p47_p2, %p46_p1 }
   0x9   :  { %p49_p4 = pnand %p48_p3, %p42_p0 }
  0x75   :  { %v17_v2 = vpop.permute.xlu0 %16 }
  0x76   :  { %v20_v3 = vsel %vm19_vm0, %v14_v0, %v17_v2 }
  0x77   :  { %v22_v4 = vadd.f32 %v21_v1, %v20_v3 }
  0x79   :  { %24 = vst.msk [vmem:[#allocation4] sm:$0xff] %vm23_vm1, %v22_v4 }
  0x7a   :  { %52 = shalt.err (!%p49_p4)
}
  0x7b   :  { %s53_s20 = scalar_lea.hbm %s108_s3, 128 }
  0x7c   :  { %p54_p5 = scmp.ne.s32.totalorder %s108_s3, %s53_s20  ;;  %p57_p6 = scmp.lt.u32.totalorder %s53_s20, %s108_s3 }
  0x7e   :  { %p59_p7 = pnand %p57_p6, %p54_p5 }
  0x80   :  { %62 = shalt.err (!%p59_p7)
}
  0x81   :  { %34 = dma.vmem_to_hbm [thread:$0]  %s32_s17, 128, %s108_s3, [#allocation5]  }
  0x82   :  { %63 = dma.done.wait [#allocation5], 128  }
  0x83   :  { %64 = vsyncadd [#allocation5], 4294967168 }
  0x84   :  { %38 = vsyncpa [#allocation5], 1 }

</bundles_post_ra>
